<compile_context>
chip_gen: v6e
topology: v6e:2x2x1
jax: 0.10.0
libtpu: 0.0.40
codegen_flags: <defaults>
</compile_context>

<pallas_src>
import numpy as np
import jax
import jax.numpy as jnp
from jax.experimental import pallas as pl
from jax.experimental.pallas import tpu as pltpu

# ----------------------------- configuration --------------------------------
IN_CH = 4
OUT_CH = 8
WINDOW_X = 32          # > 16, so the real (non-degenerate) conv path is exercised
KSIZE = 2
N = 2                  # batch

K1, K2, K3 = KSIZE, KSIZE * 2, KSIZE * 4
L0 = WINDOW_X
L1 = L0 - (K1 - 1)     # 31
L2 = L1 - (K2 - 1)     # 28
L3 = L2 - (K3 - 1)     # 21
C1, C2, C3 = OUT_CH, OUT_CH * 2, OUT_CH

LANE = 64              # per-sample lane stride (>= L1, keeps conv windows in-block)
LANES = N * LANE       # 128 = one full vreg width
SLAB_W = 128           # lane width of the packed constant slab
assert LANE >= L1 and LANES <= 128


def se_dims(L_in, ratio=0.1):
    s = int(L_in * ratio)
    if s == 0:
        s = 1
    return s, L_in // 2


S1, H1 = se_dims(L1)   # (3, 15)
S2, H2 = se_dims(L2)   # (2, 14)


def adaptive_pool_matrix(L, out):
    """(L, out) matrix reproducing torch.nn.AdaptiveAvgPool1d bin semantics."""
    P = np.zeros((L, out), dtype=np.float32)
    for i in range(out):
        start = (i * L) // out
        end = -(-((i + 1) * L) // out)  # ceil
        P[start:end, i] = 1.0 / (end - start)
    return P


def _round_up(v, m):
    return (v + m - 1) // m * m


# ----------------------- host-side constant packing --------------------------
def build_const_slab(params):
    """Pack all constants into one (rows, 128) f32 slab + a static layout dict.

    SE / pool / mean constants are built block-diagonally for the lane-batched layout
    (sample n occupies lanes [n*LANE, n*LANE + L)).
    """
    (w1, b1, se1_l1, se1_l2,
     w2, b2, se2_l1, se2_l2,
     w3, b3) = [np.asarray(p, dtype=np.float32) for p in params]

    def im2col_weight(w):
        # (Cout, Cin, K) -> (Cout, K*Cin), column index = k*Cin + i
        cout, cin, k = w.shape
        return np.transpose(w, (0, 2, 1)).reshape(cout, k * cin)

    def block_pool(L, S):
        P = adaptive_pool_matrix(L, S)                       # (L, S)
        B = np.zeros((LANES, N * S), np.float32)
        for n in range(N):
            B[n * LANE:n * LANE + L, n * S:(n + 1) * S] = P
        return B

    def block_diag(A):                                       # A: (S, H)
        s, h = A.shape
        B = np.zeros((N * s, N * h), np.float32)
        for n in range(N):
            B[n * s:(n + 1) * s, n * h:(n + 1) * h] = A
        return B

    def block_gate(G, L):                                    # G: (H, L)
        h = G.shape[0]
        B = np.zeros((N * h, LANES), np.float32)
        for n in range(N):
            B[n * h:(n + 1) * h, n * LANE:n * LANE + L] = G
        return B

    def block_mean(L):
        M = np.zeros((LANES, LANES), np.float32)
        for n in range(N):
            M[n * LANE:n * LANE + L, n] = 1.0 / L
        return M

    entries = [
        ("w1", im2col_weight(w1)),            # (C1, K1*IN_CH) = (8, 8)
        ("b1", b1.reshape(-1, 1)),            # (8, 1)
        ("p1", block_pool(L1, S1)),           # (128, 2*S1) = (128, 6)
        ("a1", block_diag(se1_l1.T)),         # (2*S1, 2*H1) = (6, 30)
        ("g1", block_gate(se1_l2.T, L1)),     # (2*H1, 128) = (30, 128)
        ("w2", im2col_weight(w2)),            # (C2, K2*C1) = (16, 32)
        ("b2", b2.reshape(-1, 1)),            # (16, 1)
        ("p2", block_pool(L2, S2)),           # (128, 4)
        ("a2", block_diag(se2_l1.T)),         # (4, 28)
        ("g2", block_gate(se2_l2.T, L2)),     # (28, 128)
        ("w3", im2col_weight(w3)),            # (C3, K3*C2) = (8, 128)
        ("b3", b3.reshape(-1, 1)),            # (8, 1)
        ("mavg", block_mean(L3)),             # (128, 128) block-averaging (final mean)
    ]

    total_rows = sum(_round_up(a.shape[0], 8) for _, a in entries)
    slab = np.zeros((total_rows, SLAB_W), dtype=np.float32)
    layout = {}
    row = 0
    for name, arr in entries:
        r, c = arr.shape
        assert c <= SLAB_W
        layout[name] = (row, r, c)
        slab[row:row + r, :c] = arr
        row += _round_up(r, 8)   # keep every block 8-sublane aligned
    return jnp.asarray(slab), layout


# ------------------------------- Pallas kernel -------------------------------
def make_kernel(layout):
    def const(slab_ref, name):
        r, nr, nc = layout[name]          # static Python ints -> static ref slice
        return slab_ref[r:r + nr, 0:nc]

    def kernel(xcols_ref, slab_ref, o_ref):
        W1 = const(slab_ref, "w1"); B1 = const(slab_ref, "b1")
        P1 = const(slab_ref, "p1"); A1 = const(slab_ref, "a1"); G1 = const(slab_ref, "g1")
        W2 = const(slab_ref, "w2"); B2 = const(slab_ref, "b2")
        P2 = const(slab_ref, "p2"); A2 = const(slab_ref, "a2"); G2 = const(slab_ref, "g2")
        W3 = const(slab_ref, "w3"); B3 = const(slab_ref, "b3")
        MAVG = const(slab_ref, "mavg")

        def squeeze_excite(y, P, A, G):
            # Block-diagonal constants: both samples share one matmul chain.
            pooled = jnp.dot(y, P, preferred_element_type=jnp.float32)            # (C, N*S)
            h = jnp.maximum(
                jnp.dot(pooled, A, preferred_element_type=jnp.float32), 0.0)      # (C, N*H)
            s = jax.nn.sigmoid(
                jnp.dot(h, G, preferred_element_type=jnp.float32))                # (C, LANES)
            return y * s

        def conv_im2col(y, W, b, K):
            # Lane-batched valid conv: the fixed per-sample stride keeps every window
            # inside its sample's lane block, so a plain lane rotation (XLU) realizes
            # the tap shift for both samples at once; one MXU matmul per conv.
            taps = [y] + [pltpu.roll(y, shift=LANES - k, axis=1) for k in range(1, K)]
            cols = jnp.concatenate(taps, axis=0)                                   # (K*Cin, LANES)
            return jnp.dot(W, cols, preferred_element_type=jnp.float32) + b        # (Cout, LANES)

        # Layer 1: im2col already done in the wrapper -> single matmul.
        y = jnp.dot(W1, xcols_ref[...], preferred_element_type=jnp.float32) + B1   # (C1, LANES)
        y = squeeze_excite(y, P1, A1, G1)
        y = conv_im2col(y, W2, B2, K2)                                             # (C2, LANES)
        y = squeeze_excite(y, P2, A2, G2)
        y = conv_im2col(y, W3, B3, K3)                                             # (C3, LANES)
        # AdaptiveAvgPool1d(1) == block-averaging matmul; one unmasked (8,128) store.
        o_ref[...] = jnp.dot(y, MAVG, preferred_element_type=jnp.float32)
        # TODO(synk): Dropout(p=0.5) is identity in eval mode; training RNG mask omitted.

    return kernel


# ------------------------------- wrapper / jit --------------------------------
def build_x_cols(x):
    """Wrapper-side im2col + lane-batching for conv1.

    x: (N, IN_CH, L0) -> (K1*IN_CH, LANES) with row = k*IN_CH + i, lane = n*LANE + l,
    holding x[n, i, l + k] for l < L1 (zero padded above).
    """
    taps = jnp.stack([x[:, :, k:k + L1] for k in range(K1)], axis=1)   # (N, K1, IN_CH, L1)
    taps = taps.reshape(N, K1 * IN_CH, L1)
    taps = jnp.pad(taps, ((0, 0), (0, 0), (0, LANE - L1)))             # (N, K1*IN_CH, LANE)
    return jnp.transpose(taps, (1, 0, 2)).reshape(K1 * IN_CH, LANES)


def make_forward(params):
    """Pack constants once (host side) and return a jitted forward(x) -> (N, C3, 1)."""
    slab, layout = build_const_slab(params)     # hoisted out of the per-call path
    kernel = make_kernel(layout)

    @jax.jit
    def forward(x, slab):
        x_cols = build_x_cols(x)                # layout plumbing, fused by XLA
        raw = pl.pallas_call(
            kernel,
            out_shape=jax.ShapeDtypeStruct((C3, LANES), jnp.float32),
            in_specs=[
                pl.BlockSpec(memory_space=pltpu.MemorySpace.VMEM),   # whole array, no
                pl.BlockSpec(memory_space=pltpu.MemorySpace.VMEM),   # double-buffering
            ],
            out_specs=pl.BlockSpec(memory_space=pltpu.MemorySpace.VMEM),
        )(x_cols, slab)
        # Column n holds sample n's pooled features; restore (N, C3, 1).
        return jnp.transpose(raw[:, :N])[..., None]

    return lambda x: forward(x, slab)


# ------------------------------ pure-JAX reference ---------------------------
def conv1d_ref(x, w, b):
    K = w.shape[-1]
    Lout = x.shape[-1] - K + 1
    out = None
    for k in range(K):
        t = jnp.einsum('oi,nil->nol', w[:, :, k], x[:, :, k:k + Lout])
        out = t if out is None else out + t
    return out + b[None, :, None]


def se_ref(x, lin1, lin2, squeeze_to):
    L = x.shape[-1]
    P = jnp.asarray(adaptive_pool_matrix(L, squeeze_to))
    pooled = jnp.einsum('ncl,ls->ncs', x, P)
    h = jnp.maximum(pooled @ lin1.T, 0.0)
    s = jax.nn.sigmoid(h @ lin2.T)
    return x * s


def forward_ref(x, params):
    (w1, b1, se1_l1, se1_l2, w2, b2, se2_l1, se2_l2, w3, b3) = params
    y = conv1d_ref(x, w1, b1)
    y = se_ref(y, se1_l1, se1_l2, S1)
    y = conv1d_ref(y, w2, b2)
    y = se_ref(y, se2_l1, se2_l2, S2)
    y = conv1d_ref(y, w3, b3)
    return jnp.mean(y, axis=-1, keepdims=True)


# ----------------------------------- main ------------------------------------
if __name__ == "__main__":
    key = jax.random.PRNGKey(0)
    ks = jax.random.split(key, 11)

    def rnd(k, shape):
        return jax.random.normal(k, shape, dtype=jnp.float32) * 0.1

    # Parameters in PyTorch-native shapes (deterministic synthetic init).
    w1 = rnd(ks[0], (C1, IN_CH, K1)); b1 = rnd(ks[1], (C1,))
    se1_l1 = rnd(ks[2], (H1, S1));    se1_l2 = rnd(ks[3], (L1, H1))
    w2 = rnd(ks[4], (C2, C1, K2));    b2 = rnd(ks[5], (C2,))
    se2_l1 = rnd(ks[6], (H2, S2));    se2_l2 = rnd(ks[7], (L2, H2))
    w3 = rnd(ks[8], (C3, C2, K3));    b3 = rnd(ks[9], (C3,))
    params = (w1, b1, se1_l1, se1_l2, w2, b2, se2_l1, se2_l2, w3, b3)

    x = jax.random.normal(ks[10], (N, IN_CH, WINDOW_X), dtype=jnp.float32)

    fwd = make_forward(params)                       # slab packed + kernel built once
    out = jax.block_until_ready(fwd(x))              # compile + run
    out = jax.block_until_ready(fwd(x))              # cached-executable steady state
    ref = jax.block_until_ready(forward_ref(x, params))

    assert out.shape == (N, C3, 1), out.shape
    np.testing.assert_allclose(np.asarray(out), np.asarray(ref),
                               rtol=1e-4, atol=1e-5)
    print("KERNEL_OK")
</pallas_src>

<mosaic_0001>
module attributes {stable_mosaic.version = 11 : i64} {
  func.func @kernel(%arg0: memref<8x128xf32, #tpu.memory_space<vmem>>, %arg1: memref<528x128xf32, #tpu.memory_space<vmem>>, %arg2: memref<8x128xf32, #tpu.memory_space<vmem>>) attributes {dimension_semantics = [], scalar_prefetch = 0 : i64, scratch_operands = 0 : i64, tpu.core_type = #tpu.core_type<tc>} {
    %c0 = arith.constant 0 : index
    %c0_0 = arith.constant 0 : index
    %0 = vector.load %arg1[%c0, %c0_0] : memref<528x128xf32, #tpu.memory_space<vmem>>, vector<8x8xf32>
    %c8 = arith.constant 8 : index
    %c0_1 = arith.constant 0 : index
    %1 = vector.load %arg1[%c8, %c0_1] : memref<528x128xf32, #tpu.memory_space<vmem>>, vector<8x1xf32>
    %c16 = arith.constant 16 : index
    %c0_2 = arith.constant 0 : index
    %2 = vector.load %arg1[%c16, %c0_2] : memref<528x128xf32, #tpu.memory_space<vmem>>, vector<128x6xf32>
    %c144 = arith.constant 144 : index
    %c0_3 = arith.constant 0 : index
    %3 = vector.load %arg1[%c144, %c0_3] : memref<528x128xf32, #tpu.memory_space<vmem>>, vector<6x30xf32>
    %c152 = arith.constant 152 : index
    %c0_4 = arith.constant 0 : index
    %4 = vector.load %arg1[%c152, %c0_4] : memref<528x128xf32, #tpu.memory_space<vmem>>, vector<30x128xf32>
    %c184 = arith.constant 184 : index
    %c0_5 = arith.constant 0 : index
    %5 = vector.load %arg1[%c184, %c0_5] : memref<528x128xf32, #tpu.memory_space<vmem>>, vector<16x32xf32>
    %c200 = arith.constant 200 : index
    %c0_6 = arith.constant 0 : index
    %6 = vector.load %arg1[%c200, %c0_6] : memref<528x128xf32, #tpu.memory_space<vmem>>, vector<16x1xf32>
    %c216 = arith.constant 216 : index
    %c0_7 = arith.constant 0 : index
    %7 = vector.load %arg1[%c216, %c0_7] : memref<528x128xf32, #tpu.memory_space<vmem>>, vector<128x4xf32>
    %c344 = arith.constant 344 : index
    %c0_8 = arith.constant 0 : index
    %8 = vector.load %arg1[%c344, %c0_8] : memref<528x128xf32, #tpu.memory_space<vmem>>, vector<4x28xf32>
    %c352 = arith.constant 352 : index
    %c0_9 = arith.constant 0 : index
    %9 = vector.load %arg1[%c352, %c0_9] : memref<528x128xf32, #tpu.memory_space<vmem>>, vector<28x128xf32>
    %c384 = arith.constant 384 : index
    %c0_10 = arith.constant 0 : index
    %10 = vector.load %arg1[%c384, %c0_10] : memref<528x128xf32, #tpu.memory_space<vmem>>, vector<8x128xf32>
    %c392 = arith.constant 392 : index
    %c0_11 = arith.constant 0 : index
    %11 = vector.load %arg1[%c392, %c0_11] : memref<528x128xf32, #tpu.memory_space<vmem>>, vector<8x1xf32>
    %c400 = arith.constant 400 : index
    %c0_12 = arith.constant 0 : index
    %12 = vector.load %arg1[%c400, %c0_12] : memref<528x128xf32, #tpu.memory_space<vmem>>, vector<128x128xf32>
    %c0_13 = arith.constant 0 : index
    %c0_14 = arith.constant 0 : index
    %13 = vector.load %arg0[%c0_13, %c0_14] : memref<8x128xf32, #tpu.memory_space<vmem>>, vector<8x128xf32>
    %cst = arith.constant dense<0.000000e+00> : vector<8x128xf32>
    %14 = tpu.matmul %0, %13, %cst {dimension_numbers = #tpu.dot_dimension_numbers<[1], [0], [0], [1], [0, 0, 1, 1], [], []>} : vector<8x8xf32>, vector<8x128xf32>, vector<8x128xf32> -> vector<8x128xf32>
    %15 = vector.broadcast %1 : vector<8x1xf32> to vector<8x128xf32>
    %16 = arith.addf %14, %15 : vector<8x128xf32>
    %cst_15 = arith.constant dense<0.000000e+00> : vector<8x6xf32>
    %17 = tpu.matmul %16, %2, %cst_15 {dimension_numbers = #tpu.dot_dimension_numbers<[1], [0], [0], [1], [0, 0, 1, 1], [], []>} : vector<8x128xf32>, vector<128x6xf32>, vector<8x6xf32> -> vector<8x6xf32>
    %cst_16 = arith.constant dense<0.000000e+00> : vector<8x30xf32>
    %18 = tpu.matmul %17, %3, %cst_16 {dimension_numbers = #tpu.dot_dimension_numbers<[1], [0], [0], [1], [0, 0, 1, 1], [], []>} : vector<8x6xf32>, vector<6x30xf32>, vector<8x30xf32> -> vector<8x30xf32>
    %cst_17 = arith.constant 0.000000e+00 : f32
    %19 = vector.broadcast %cst_17 : f32 to vector<8x30xf32>
    %20 = arith.maximumf %18, %19 : vector<8x30xf32>
    %cst_18 = arith.constant dense<0.000000e+00> : vector<8x128xf32>
    %21 = tpu.matmul %20, %4, %cst_18 {dimension_numbers = #tpu.dot_dimension_numbers<[1], [0], [0], [1], [0, 0, 1, 1], [], []>} : vector<8x30xf32>, vector<30x128xf32>, vector<8x128xf32> -> vector<8x128xf32>
    %22 = arith.negf %21 : vector<8x128xf32>
    %23 = math.exp %22 : vector<8x128xf32>
    %cst_19 = arith.constant 1.000000e+00 : f32
    %24 = vector.broadcast %cst_19 : f32 to vector<8x128xf32>
    %25 = arith.addf %24, %23 : vector<8x128xf32>
    %26 = arith.divf %24, %25 : vector<8x128xf32>
    %27 = arith.mulf %16, %26 : vector<8x128xf32>
    %c127_i32 = arith.constant 127 : i32
    %28 = tpu.dynamic_rotate %27 by %c127_i32 dim 1 : vector<8x128xf32>, i32 -> vector<8x128xf32>
    %c126_i32 = arith.constant 126 : i32
    %29 = tpu.dynamic_rotate %27 by %c126_i32 dim 1 : vector<8x128xf32>, i32 -> vector<8x128xf32>
    %c125_i32 = arith.constant 125 : i32
    %30 = tpu.dynamic_rotate %27 by %c125_i32 dim 1 : vector<8x128xf32>, i32 -> vector<8x128xf32>
    %31 = tpu.concatenate %27, %28, %29, %30 in 0 : vector<8x128xf32>, vector<8x128xf32>, vector<8x128xf32>, vector<8x128xf32> -> vector<32x128xf32>
    %cst_20 = arith.constant dense<0.000000e+00> : vector<16x128xf32>
    %32 = tpu.matmul %5, %31, %cst_20 {dimension_numbers = #tpu.dot_dimension_numbers<[1], [0], [0], [1], [0, 0, 1, 1], [], []>} : vector<16x32xf32>, vector<32x128xf32>, vector<16x128xf32> -> vector<16x128xf32>
    %33 = vector.broadcast %6 : vector<16x1xf32> to vector<16x128xf32>
    %34 = arith.addf %32, %33 : vector<16x128xf32>
    %cst_21 = arith.constant dense<0.000000e+00> : vector<16x4xf32>
    %35 = tpu.matmul %34, %7, %cst_21 {dimension_numbers = #tpu.dot_dimension_numbers<[1], [0], [0], [1], [0, 0, 1, 1], [], []>} : vector<16x128xf32>, vector<128x4xf32>, vector<16x4xf32> -> vector<16x4xf32>
    %cst_22 = arith.constant dense<0.000000e+00> : vector<16x28xf32>
    %36 = tpu.matmul %35, %8, %cst_22 {dimension_numbers = #tpu.dot_dimension_numbers<[1], [0], [0], [1], [0, 0, 1, 1], [], []>} : vector<16x4xf32>, vector<4x28xf32>, vector<16x28xf32> -> vector<16x28xf32>
    %cst_23 = arith.constant 0.000000e+00 : f32
    %37 = vector.broadcast %cst_23 : f32 to vector<16x28xf32>
    %38 = arith.maximumf %36, %37 : vector<16x28xf32>
    %cst_24 = arith.constant dense<0.000000e+00> : vector<16x128xf32>
    %39 = tpu.matmul %38, %9, %cst_24 {dimension_numbers = #tpu.dot_dimension_numbers<[1], [0], [0], [1], [0, 0, 1, 1], [], []>} : vector<16x28xf32>, vector<28x128xf32>, vector<16x128xf32> -> vector<16x128xf32>
    %40 = arith.negf %39 : vector<16x128xf32>
    %41 = math.exp %40 : vector<16x128xf32>
    %cst_25 = arith.constant 1.000000e+00 : f32
    %42 = vector.broadcast %cst_25 : f32 to vector<16x128xf32>
    %43 = arith.addf %42, %41 : vector<16x128xf32>
    %44 = arith.divf %42, %43 : vector<16x128xf32>
    %45 = arith.mulf %34, %44 : vector<16x128xf32>
    %c127_i32_26 = arith.constant 127 : i32
    %46 = tpu.dynamic_rotate %45 by %c127_i32_26 dim 1 : vector<16x128xf32>, i32 -> vector<16x128xf32>
    %c126_i32_27 = arith.constant 126 : i32
    %47 = tpu.dynamic_rotate %45 by %c126_i32_27 dim 1 : vector<16x128xf32>, i32 -> vector<16x128xf32>
    %c125_i32_28 = arith.constant 125 : i32
    %48 = tpu.dynamic_rotate %45 by %c125_i32_28 dim 1 : vector<16x128xf32>, i32 -> vector<16x128xf32>
    %c124_i32 = arith.constant 124 : i32
    %49 = tpu.dynamic_rotate %45 by %c124_i32 dim 1 : vector<16x128xf32>, i32 -> vector<16x128xf32>
    %c123_i32 = arith.constant 123 : i32
    %50 = tpu.dynamic_rotate %45 by %c123_i32 dim 1 : vector<16x128xf32>, i32 -> vector<16x128xf32>
    %c122_i32 = arith.constant 122 : i32
    %51 = tpu.dynamic_rotate %45 by %c122_i32 dim 1 : vector<16x128xf32>, i32 -> vector<16x128xf32>
    %c121_i32 = arith.constant 121 : i32
    %52 = tpu.dynamic_rotate %45 by %c121_i32 dim 1 : vector<16x128xf32>, i32 -> vector<16x128xf32>
    %53 = tpu.concatenate %45, %46, %47, %48, %49, %50, %51, %52 in 0 : vector<16x128xf32>, vector<16x128xf32>, vector<16x128xf32>, vector<16x128xf32>, vector<16x128xf32>, vector<16x128xf32>, vector<16x128xf32>, vector<16x128xf32> -> vector<128x128xf32>
    %cst_29 = arith.constant dense<0.000000e+00> : vector<8x128xf32>
    %54 = tpu.matmul %10, %53, %cst_29 {dimension_numbers = #tpu.dot_dimension_numbers<[1], [0], [0], [1], [0, 0, 1, 1], [], []>} : vector<8x128xf32>, vector<128x128xf32>, vector<8x128xf32> -> vector<8x128xf32>
    %55 = vector.broadcast %11 : vector<8x1xf32> to vector<8x128xf32>
    %56 = arith.addf %54, %55 : vector<8x128xf32>
    %cst_30 = arith.constant dense<0.000000e+00> : vector<8x128xf32>
    %57 = tpu.matmul %56, %12, %cst_30 {dimension_numbers = #tpu.dot_dimension_numbers<[1], [0], [0], [1], [0, 0, 1, 1], [], []>} : vector<8x128xf32>, vector<128x128xf32>, vector<8x128xf32> -> vector<8x128xf32>
    %c0_31 = arith.constant 0 : index
    %c0_32 = arith.constant 0 : index
    %58 = vector.load %arg2[%c0_31, %c0_32] : memref<8x128xf32, #tpu.memory_space<vmem>>, vector<8x128xf32>
    tpu.vector_store %arg2[%c0_31, %c0_32], %57 {strides = array<i32>} : memref<8x128xf32, #tpu.memory_space<vmem>>, vector<8x128xf32>,
    return
  }
}

</mosaic_0001>

<bundles_post_ra>
// kernel: forward.1
= control target key start
LH: loop header
LB: loop body
LE: loop exit
PB: predicated region body
PF: predicated region fallthrough
CT: control target
= control target key end

     0   :  { %7 = vsyncpa [#allocation3], 0  ;;  %s1289_s9 = smov [#allocation2]   ;;  %s1427_s0 = inlined_call_operand.vmem [shape: f32[8,128], index: 0, kind: input, shape index: {}]   ;;  %s1428_s1 = inlined_call_operand.hbm [shape: f32[528,128], index: 1, kind: input, shape index: {}]   ;;  %s1429_s2 = inlined_call_operand.vmem [shape: f32[8,128], index: 2, kind: output, shape index: {}]  }
   0x1   :  { %s15_s10 = sshll.u32 %s1289_s9, 4  ;;  %s16_s10 = int_to_ptr.vmem [resolvable:$true] %s15_s10 }
   0x2   :  { %s1275_s11 = scalar_lea.vmem %s16_s10, 8448  ;;  %p1280_p1 = scmp.lt.s32.totalorder %s16_s10, %s16_s10 }
   0x3   :  { %p1276_p0 = scmp.ne.s32.totalorder %s16_s10, %s1275_s11  ;;  %p1281_p2 = scmp.lt.s32.totalorder %s1275_s11, %s1275_s11 }
   0x5   :  { %p1282_p3 = por %p1281_p2, %p1280_p1 }
   0x7   :  { %p1283_p4 = pnand %p1282_p3, %p1276_p0 }
   0x9   :  { %1286 = shalt.err (!%p1283_p4)
}
   0xa   :  { %s1290_s12 = smov 128   ;;  %s1291_s13 = smov 8  }
   0xb   :  { %21 = dma.hbm_to_vmem [thread:$0]  %s1428_s1, 8448, %s16_s10, [#allocation3], %s1290_s12, %s1290_s12, %s1291_s13  }
   0xc   :  { %1287 = dma.done.wait [#allocation3], 8448  }
   0xd   :  { %1288 = vsyncadd [#allocation3], 4294958848  ;;  %v1292_v0 = vmov 0.0   ;;  %vm1293_vm0 = vmmov 0   ;;  %v1294_v1 = vmov 0   ;;  %vm97_vm1 = vcmask 64512  }
   0xe   :  { %1052 = vmatprep.subr.mxu1 %v1292_v0  ;;  %1054 = vmatprep.mubr.msk.f32.mxu1 %vm1293_vm0, %v1292_v0  ;;  %v91_v2 = vld [vmem:[%s1427_s0] sm:$0xff]  ;;  %v26_v4 = vld [vmem:[#allocation2 + $0x8] sm:$0xff]  ;;  %v40_v7 = vld [vmem:[#allocation2 + $0x78] sm:$0xff]  ;;  %vm245_vm2 = vcmask 1045504   ;;  %vm241_vm3 = vcmask 48128   ;;  %vm320_vm4 = vcmask 244736  }
   0xf   :  { %1253 = vset.pattern.permute.xlu0 %v1294_v1  ;;  %1092 = vmatprep.subr.mxu0 %v1292_v0  ;;  %v25_v3 = vld [vmem:[#allocation2] sm:$0xff]  ;;  %v42_v5 = vld [vmem:[#allocation2 + $0x88] sm:$0xff]  ;;  %v39_v8 = vld [vmem:[#allocation2 + $0x70] sm:$0xff]  ;;  %vm420_vm5 = vcmask 261120   ;;  %s1295_s0 = smov 126   ;;  %s1296_s17 = smov 125  }
  0x10   :  { %1094 = vmatprep.mubr.msk.f32.mxu0 %vm1293_vm0, %v1292_v0  ;;  %1254 = vset.pattern.permute.xlu1 %v1294_v1  ;;  %v41_v6 = vld [vmem:[#allocation2 + $0x80] sm:$0xff]  ;;  %v38_v9 = vld [vmem:[#allocation2 + $0x68] sm:$0xff]  ;;  %v36_v11 = vld [vmem:[#allocation2 + $0x58] sm:$0xff]  ;;  %s1297_s18 = smov 127   ;;  %vm584_vm6 = vcmask 1043456   ;;  %vm577_vm7 = vcmask 31744  }
  0x11   :  { %1053 = vmatpush3.msra.mxu1 %v91_v2  ;;  %94 = vperm.xlu0 %1253, %v26_v4   ;;  %v37_v10 = vld [vmem:[#allocation2 + $0x60] sm:$0xff]  ;;  %v35_v12 = vld [vmem:[#allocation2 + $0x50] sm:$0xff]  ;;  %v34_v13 = vld [vmem:[#allocation2 + $0x48] sm:$0xff]  ;;  %vm665_vm8 = vcmask 228352   ;;  %s1298_s19 = smov 121   ;;  %s1299_s20 = smov 122  }
  0x12   :  { %1055 = vmatmul.mubr.msk.f32.vlgmr.msra.gmra.mxu1 %vm97_vm1, %v25_v3  ;;  %1057 = vmatprep.subr.mxu1 %v1292_v0  ;;  %v33_v14 = vld [vmem:[#allocation2 + $0x40] sm:$0xff]  ;;  %v32_v15 = vld [vmem:[#allocation2 + $0x38] sm:$0xff]  ;;  %v31_v16 = vld [vmem:[#allocation2 + $0x30] sm:$0xff]  ;;  %s1300_s21 = smov 123   ;;  %s1301_s22 = smov 124  }
  0x13   :  { %1058 = vmatpush3.msra.mxu1 %v42_v5  ;;  %1089 = vmatprep.mubr.msk.f32.mxu1 %vm1293_vm0, %v1292_v0  ;;  %v30_v17 = vld [vmem:[#allocation2 + $0x28] sm:$0xff]  ;;  %v29_v18 = vld [vmem:[#allocation2 + $0x20] sm:$0xff]  ;;  %v28_v19 = vld [vmem:[#allocation2 + $0x18] sm:$0xff] }
  0x14   :  { %1059 = vmatprep.subr.mxu1 %v1292_v0  ;;  %v27_v20 = vld [vmem:[#allocation2 + $0x10] sm:$0xff]  ;;  %v46_v28 = vld [vmem:[#allocation2 + $0xa8] sm:$0xff]  ;;  %v45_v30 = vld [vmem:[#allocation2 + $0xa0] sm:$0xff] }
  0x15   :  { %1060 = vmatpush3.msra.mxu1 %v41_v6  ;;  %v43_v25 = vld [vmem:[#allocation2 + $0x90] sm:$0x3f]  ;;  %v44_v31 = vld [vmem:[#allocation2 + $0x98] sm:$0xff]  ;;  %v50_v43 = vld [vmem:[#allocation2 + $0xc8] sm:$0xff] }
  0x16   :  { %1061 = vmatprep.subr.mxu1 %v1292_v0  ;;  %1093 = vmatpush3.msk.msra.mxu0 %vm245_vm2, %v43_v25  ;;  %v47_v26 = vld [vmem:[#allocation2 + $0xb0] sm:$0x3f]  ;;  %v48_v40 = vld [vmem:[#allocation2 + $0xb8] sm:$0xff]  ;;  %v49_v48 = vld [vmem:[#allocation2 + $0xc0] sm:$0xff] }
  0x17   :  { %1062 = vmatpush3.msra.mxu1 %v40_v7  ;;  %1097 = vmatprep.subr.mxu0 %v1292_v0  ;;  %v51_v44 = vld [vmem:[#allocation2 + $0xd0] sm:$0xff]  ;;  %v66_v50 = vld [vmem:[#allocation2 + $0x148] sm:$0xff]  ;;  %v65_v51 = vld [vmem:[#allocation2 + $0x140] sm:$0xff] }
  0x18   :  { %1063 = vmatprep.subr.mxu1 %v1292_v0  ;;  %v67_v49 = vld [vmem:[#allocation2 + $0x150] sm:$0xff]  ;;  %v64_v52 = vld [vmem:[#allocation2 + $0x138] sm:$0xff]  ;;  %v62_v54 = vld [vmem:[#allocation2 + $0x128] sm:$0xff] }
  0x19   :  { %1064 = vmatpush3.msra.mxu1 %v39_v8  ;;  %v63_v53 = vld [vmem:[#allocation2 + $0x130] sm:$0xff]  ;;  %v61_v55 = vld [vmem:[#allocation2 + $0x120] sm:$0xff]  ;;  %v60_v56 = vld [vmem:[#allocation2 + $0x118] sm:$0xff] }
  0x1a   :  { %1065 = vmatprep.subr.mxu1 %v1292_v0  ;;  %v59_v57 = vld [vmem:[#allocation2 + $0x110] sm:$0xff]  ;;  %v58_v58 = vld [vmem:[#allocation2 + $0x108] sm:$0xff]  ;;  %v57_v59 = vld [vmem:[#allocation2 + $0x100] sm:$0xff] }
  0x1b   :  { %1066 = vmatpush3.msra.mxu1 %v38_v9  ;;  %v56_v60 = vld [vmem:[#allocation2 + $0xf8] sm:$0xff]  ;;  %v55_v61 = vld [vmem:[#allocation2 + $0xf0] sm:$0xff]  ;;  %v54_v62 = vld [vmem:[#allocation2 + $0xe8] sm:$0xff] }
  0x1c   :  { %1067 = vmatprep.subr.mxu1 %v1292_v0  ;;  %v53_v63 = vld [vmem:[#allocation2 + $0xe0] sm:$0xff]  ;;  %v52_v1 = vld [vmem:[#allocation2 + $0xd8] sm:$0xff] }
  0x1d   :  { %1068 = vmatpush3.msra.mxu1 %v37_v10  ;;  %v68_v2 = vld [vmem:[#allocation2 + $0x158] sm:$0xf] }
  0x1e   :  { %1069 = vmatprep.subr.mxu1 %v1292_v0  ;;  %v72_v9 = vld [vmem:[#allocation2 + $0x178] sm:$0xf] }
  0x1f   :  { %1070 = vmatpush3.msra.mxu1 %v36_v11 }
  0x20   :  { %1071 = vmatprep.subr.mxu1 %v1292_v0 }
  0x21   :  { %1072 = vmatpush3.msra.mxu1 %v35_v12  ;;  %v71_v12 = vld [vmem:[#allocation2 + $0x170] sm:$0xff] }
  0x22   :  { %1073 = vmatprep.subr.mxu1 %v1292_v0 }
  0x23   :  { %1074 = vmatpush3.msra.mxu1 %v34_v13  ;;  %v70_v13 = vld [vmem:[#allocation2 + $0x168] sm:$0xff] }
  0x24   :  { %1075 = vmatprep.subr.mxu1 %v1292_v0 }
  0x25   :  { %1076 = vmatpush3.msra.mxu1 %v33_v14  ;;  %v69_v14 = vld [vmem:[#allocation2 + $0x160] sm:$0xff] }
  0x26   :  { %1077 = vmatprep.subr.mxu1 %v1292_v0 }
  0x27   :  { %1078 = vmatpush3.msra.mxu1 %v32_v15 }
  0x28   :  { %1079 = vmatprep.subr.mxu1 %v1292_v0 }
  0x29   :  { %1080 = vmatpush3.msra.mxu1 %v31_v16 }
  0x2a   :  { %1081 = vmatprep.subr.mxu1 %v1292_v0 }
  0x2b   :  { %1082 = vmatpush3.msra.mxu1 %v30_v17 }
  0x2c   :  { %1083 = vmatprep.subr.mxu1 %v1292_v0 }
  0x2d   :  { %1084 = vmatpush3.msra.mxu1 %v29_v18 }
  0x2e   :  { %1085 = vmatprep.subr.mxu1 %v1292_v0 }
  0x2f   :  { %1086 = vmatpush3.msra.mxu1 %v28_v19 }
  0x30   :  { %1087 = vmatprep.subr.mxu1 %v1292_v0 }
  0x31   :  { %1088 = vmatpush3.msra.mxu1 %v27_v20 }
  0x32   :  { %1154 = vmatprep.subr.msk.mxu1 %vm584_vm6, %v68_v2 }
  0x8c   :  { %v95_v21 = vpop.permute.xlu0 %94 }
  0xd2   :  { %v167_v22 = vpop.f32.mrf.mxu1 }
  0xd3   :  { %v168_v23 = vadd.f32 %v167_v22, %v95_v21 }
  0xd4   :  { %v1056_v24 = vpop.f32.mrf.mxu1 }
  0xd5   :  { %1090 = vmatmul.mubr.f32.vlgmr.msra.gmra.mxu1 %v168_v23 }
  0xd6   :  { %1155 = vmatpush3.msk.msra.mxu1 %vm584_vm6, %v68_v2 }
  0xd7   :  { %1159 = vmatprep.subr.msk.mxu1 %vm584_vm6, %v72_v9 }
 0x195   :  { %v237_v27 = vpop.f32.mrf.mxu1 }
 0x196   :  { %1095 = vmatmul.mubr.msk.f32.vlgmr.msra.gmra.mxu0 %vm241_vm3, %v237_v27 }
 0x197   :  { %v1091_v29 = vpop.f32.mrf.mxu1  ;;  %1098 = vmatpush3.msk.msra.mxu0 %vm245_vm2, %v47_v26  ;;  %1105 = vmatprep.mubr.msk.f32.mxu0 %vm1293_vm0, %v1292_v0 }
 0x198   :  { %1099 = vmatprep.subr.mxu0 %v1292_v0 }
 0x199   :  { %1100 = vmatpush3.msra.mxu0 %v46_v28 }
 0x19a   :  { %1101 = vmatprep.subr.mxu0 %v1292_v0 }
 0x19b   :  { %1102 = vmatpush3.msra.mxu0 %v45_v30 }
 0x19c   :  { %1103 = vmatprep.subr.mxu0 %v1292_v0 }
 0x19d   :  { %1104 = vmatpush3.msra.mxu0 %v44_v31  ;;  %v90_v31 = vld [vmem:[#allocation2 + $0x208] sm:$0xff] }
 0x256   :  { %v315_v32 = vpop.f32.mrf.mxu0 }
 0x257   :  { %v319_v33 = vmax.f32 %v315_v32, 0.0  ;;  %v89_v32 = vld [vmem:[#allocation2 + $0x200] sm:$0xff] }
 0x258   :  { %v1096_v34 = vpop.f32.mrf.mxu0 }
 0x259   :  { %1106 = vmatmul.mubr.msk.f32.vlgmr.msra.gmra.mxu0 %vm320_vm4, %v319_v33  ;;  %v74_v33 = vld [vmem:[#allocation2 + $0x188] sm:$0xff]  ;;  %v88_v34 = vld [vmem:[#allocation2 + $0x1f8] sm:$0xff] }
 0x25a   :  { %1116 = vmatprep.mubr.msk.f32.mxu0 %vm420_vm5, %v48_v40  ;;  %v82_v40 = vld [vmem:[#allocation2 + $0x1c8] sm:$0xff] }
 0x319   :  { %v393_v35 = vpop.f32.mrf.mxu0 }
 0x31a   :  { %v948_v36 = vmul.f32 -1.442695, %v393_v35  ;;  %v87_v35 = vld [vmem:[#allocation2 + $0x1f0] sm:$0xff] }
 0x31b   :  { %v1107_v37 = vpop.f32.mrf.mxu0 }
 0x31c   :  { %1255 = vpow2.f32 %v948_v36  ;;  %v86_v36 = vld [vmem:[#allocation2 + $0x1e8] sm:$0xff]  ;;  %v85_v37 = vld [vmem:[#allocation2 + $0x1e0] sm:$0xff] }
 0x329   :  { %v1256_v38 = vpop.eup %1255 }
 0x32a   :  { %v400_v39 = vadd.f32 1.0, %v1256_v38  ;;  %v84_v38 = vld [vmem:[#allocation2 + $0x1d8] sm:$0xff] }
 0x32c   :  { %1257 = vrcp.f32 %v400_v39  ;;  %v83_v39 = vld [vmem:[#allocation2 + $0x1d0] sm:$0xff] }
 0x339   :  { %v1258_v41 = vpop.eup %1257 }
 0x33a   :  { %v403_v42 = vmul.f32 %v1258_v41, %v168_v23  ;;  %v81_v41 = vld [vmem:[#allocation2 + $0x1c0] sm:$0xff] }
 0x33c   :  { %406 = vrot.lane.b32.xlu1 %v403_v42, %s1295_s0  ;;  %408 = vrot.lane.b32.xlu0 %v403_v42, %s1296_s17 }
 0x340   :  { %404 = vrot.lane.b32.xlu1 %v403_v42, %s1297_s18  ;;  %412 = vperm.xlu0 %1253, %v50_v43   ;;  %v79_v43 = vld [vmem:[#allocation2 + $0x1b0] sm:$0xff] }
 0x344   :  { %417 = vperm.xlu1 %1254, %v51_v44   ;;  %v78_v44 = vld [vmem:[#allocation2 + $0x1a8] sm:$0xff] }
 0x3ae   :  { %v407_v45 = vpop.permute.xlu1 %406  ;;  %v409_v46 = vpop.permute.xlu0 %408 }
 0x3af   :  { %1108 = vmatprep.subr.mxu0 %v409_v46 }
 0x3b0   :  { %1109 = vmatpush3.msra.mxu0 %v409_v46 }
 0x3b1   :  { %1110 = vmatprep.subr.mxu0 %v407_v45 }
 0x3b2   :  { %v405_v47 = vpop.permute.xlu1 %404  ;;  %1111 = vmatpush3.msra.mxu0 %v407_v45  ;;  %v77_v45 = vld [vmem:[#allocation2 + $0x1a0] sm:$0xff] }
 0x3b3   :  { %1112 = vmatprep.subr.mxu0 %v405_v47 }
 0x3b4   :  { %1113 = vmatpush3.msra.mxu0 %v405_v47 }
 0x3b5   :  { %1114 = vmatprep.subr.mxu0 %v403_v42 }
 0x3b6   :  { %1115 = vmatpush3.msra.mxu0 %v403_v42  ;;  %v80_v42 = vld [vmem:[#allocation2 + $0x1b8] sm:$0xff] }
 0x3b7   :  { %1117 = vmatmul.mubr.msk.f32.vlgmr.msra.gmra.mxu0 %vm420_vm5, %v49_v48  ;;  %1119 = vmatprep.subr.mxu0 %v67_v49 }
 0x3b8   :  { %1120 = vmatpush3.msra.mxu0 %v67_v49 }
 0x3b9   :  { %1121 = vmatprep.subr.mxu0 %v66_v50 }
 0x3ba   :  { %1122 = vmatpush3.msra.mxu0 %v66_v50 }
 0x3bb   :  { %1123 = vmatprep.subr.mxu0 %v65_v51  ;;  %v413_v5 = vpop.permute.xlu0 %412 }
 0x3bc   :  { %1124 = vmatpush3.msra.mxu0 %v65_v51 }
 0x3bd   :  { %1125 = vmatprep.subr.mxu0 %v64_v52 }
 0x3be   :  { %1126 = vmatpush3.msra.mxu0 %v64_v52 }
 0x3bf   :  { %1127 = vmatprep.subr.mxu0 %v63_v53  ;;  %v418_v4 = vpop.permute.xlu1 %417 }
 0x3c0   :  { %1128 = vmatpush3.msra.mxu0 %v63_v53 }
 0x3c1   :  { %1129 = vmatprep.subr.mxu0 %v62_v54 }
 0x3c2   :  { %1130 = vmatpush3.msra.mxu0 %v62_v54 }
 0x3c3   :  { %1131 = vmatprep.subr.mxu0 %v61_v55 }
 0x3c4   :  { %1132 = vmatpush3.msra.mxu0 %v61_v55 }
 0x3c5   :  { %1133 = vmatprep.subr.mxu0 %v60_v56 }
 0x3c6   :  { %1134 = vmatpush3.msra.mxu0 %v60_v56 }
 0x3c7   :  { %1135 = vmatprep.subr.mxu0 %v59_v57 }
 0x3c8   :  { %1136 = vmatpush3.msra.mxu0 %v59_v57 }
 0x3c9   :  { %1137 = vmatprep.subr.mxu0 %v58_v58 }
 0x3ca   :  { %1138 = vmatpush3.msra.mxu0 %v58_v58 }
 0x3cb   :  { %1139 = vmatprep.subr.mxu0 %v57_v59 }
 0x3cc   :  { %1140 = vmatpush3.msra.mxu0 %v57_v59 }
 0x3cd   :  { %1141 = vmatprep.subr.mxu0 %v56_v60 }
 0x3ce   :  { %1142 = vmatpush3.msra.mxu0 %v56_v60  ;;  %v73_v60 = vld [vmem:[#allocation2 + $0x180] sm:$0xff] }
 0x3cf   :  { %1143 = vmatprep.subr.mxu0 %v55_v61 }
 0x3d0   :  { %1144 = vmatpush3.msra.mxu0 %v55_v61  ;;  %v76_v61 = vld [vmem:[#allocation2 + $0x198] sm:$0xff] }
 0x3d1   :  { %1145 = vmatprep.subr.mxu0 %v54_v62 }
 0x3d2   :  { %1146 = vmatpush3.msra.mxu0 %v54_v62  ;;  %v75_v62 = vld [vmem:[#allocation2 + $0x190] sm:$0xff] }
 0x3d3   :  { %1147 = vmatprep.subr.mxu0 %v53_v63 }
 0x3d4   :  { %1148 = vmatpush3.msra.mxu0 %v53_v63 }
 0x3d5   :  { %1149 = vmatprep.subr.mxu0 %v52_v1 }
 0x3d6   :  { %1150 = vmatpush3.msra.mxu0 %v52_v1 }
 0x3d7   :  { %1205 = vmatprep.subr.mxu0 %v1292_v0 }
 0x477   :  { %v1118_v3 = vpop.f32.mrf.mxu0 }
 0x478   :  { %v499_v8 = vadd.f32 %v1118_v3, %v418_v4 }
 0x479   :  { %v493_v6 = vpop.f32.mrf.mxu0 }
 0x47a   :  { %v494_v7 = vadd.f32 %v493_v6, %v413_v5 }
 0x47c   :  { %1151 = vmatprep.mubr.f32.mxu0 %v494_v7 }
 0x47d   :  { %1152 = vmatmul.mubr.f32.vlgmr.msra.gmra.mxu0 %v499_v8 }
 0x47e   :  { %1237 = vmatprep.mubr.msk.f32.mxu0 %vm1293_vm0, %v1292_v0  ;;  %1206 = vmatpush3.msra.mxu0 %v90_v31 }
 0x47f   :  { %1207 = vmatprep.subr.mxu0 %v1292_v0 }
 0x480   :  { %1208 = vmatpush3.msra.mxu0 %v89_v32 }
 0x481   :  { %1209 = vmatprep.subr.mxu0 %v1292_v0 }
 0x482   :  { %1210 = vmatpush3.msra.mxu0 %v88_v34 }
 0x483   :  { %1211 = vmatprep.subr.mxu0 %v1292_v0 }
 0x484   :  { %1212 = vmatpush3.msra.mxu0 %v87_v35 }
 0x485   :  { %1213 = vmatprep.subr.mxu0 %v1292_v0 }
 0x486   :  { %1214 = vmatpush3.msra.mxu0 %v86_v36 }
 0x487   :  { %1215 = vmatprep.subr.mxu0 %v1292_v0 }
 0x488   :  { %1216 = vmatpush3.msra.mxu0 %v85_v37 }
 0x489   :  { %1217 = vmatprep.subr.mxu0 %v1292_v0 }
 0x48a   :  { %1218 = vmatpush3.msra.mxu0 %v84_v38 }
 0x48b   :  { %1219 = vmatprep.subr.mxu0 %v1292_v0 }
 0x48c   :  { %1220 = vmatpush3.msra.mxu0 %v83_v39 }
 0x48d   :  { %1221 = vmatprep.subr.mxu0 %v1292_v0 }
 0x48e   :  { %1222 = vmatpush3.msra.mxu0 %v82_v40 }
 0x48f   :  { %1223 = vmatprep.subr.mxu0 %v1292_v0 }
 0x490   :  { %1224 = vmatpush3.msra.mxu0 %v81_v41 }
 0x491   :  { %1225 = vmatprep.subr.mxu0 %v1292_v0 }
 0x492   :  { %1226 = vmatpush3.msra.mxu0 %v80_v42 }
 0x493   :  { %1227 = vmatprep.subr.mxu0 %v1292_v0 }
 0x494   :  { %1228 = vmatpush3.msra.mxu0 %v79_v43 }
 0x495   :  { %1229 = vmatprep.subr.mxu0 %v1292_v0 }
 0x496   :  { %1230 = vmatpush3.msra.mxu0 %v78_v44 }
 0x497   :  { %1231 = vmatprep.subr.mxu0 %v1292_v0 }
 0x498   :  { %1232 = vmatpush3.msra.mxu0 %v77_v45 }
 0x499   :  { %1233 = vmatprep.subr.mxu0 %v1292_v0 }
 0x49a   :  { %1234 = vmatpush3.msra.mxu0 %v76_v61 }
 0x49b   :  { %1235 = vmatprep.subr.mxu0 %v1292_v0 }
 0x49c   :  { %1236 = vmatpush3.msra.mxu0 %v75_v62 }
 0x53d   :  { %v1153_v10 = vpop.f32.mrf.mxu0 }
 0x53f   :  { %v568_v11 = vpop.f32.mrf.mxu0 }
 0x540   :  { %1156 = vmatprep.mubr.msk.f32.mxu1 %vm577_vm7, %v568_v11 }
 0x541   :  { %1157 = vmatmul.mubr.msk.f32.vlgmr.msra.gmra.mxu1 %vm577_vm7, %v1153_v10 }
 0x542   :  { %1160 = vmatpush3.msk.msra.mxu1 %vm584_vm6, %v72_v9 }
 0x543   :  { %1161 = vmatprep.subr.mxu1 %v71_v12 }
 0x544   :  { %1162 = vmatpush3.msra.mxu1 %v71_v12 }
 0x545   :  { %1163 = vmatprep.subr.mxu1 %v70_v13 }
 0x546   :  { %1164 = vmatpush3.msra.mxu1 %v70_v13 }
 0x547   :  { %1165 = vmatprep.subr.mxu1 %v69_v14 }
 0x548   :  { %1166 = vmatpush3.msra.mxu1 %v69_v14 }
 0x549   :  { %1170 = vmatprep.subr.mxu1 %v1292_v0 }
 0x601   :  { %v1158_v15 = vpop.f32.mrf.mxu1 }
 0x602   :  { %v664_v18 = vmax.f32 %v1158_v15, 0.0 }
 0x603   :  { %v654_v16 = vpop.f32.mrf.mxu1 }
 0x604   :  { %v663_v17 = vmax.f32 %v654_v16, 0.0 }
 0x606   :  { %1167 = vmatprep.mubr.msk.f32.mxu1 %vm665_vm8, %v663_v17 }
 0x607   :  { %1168 = vmatmul.mubr.msk.f32.vlgmr.msra.gmra.mxu1 %vm665_vm8, %v664_v18 }
 0x608   :  { %1202 = vmatprep.mubr.msk.f32.mxu1 %vm1293_vm0, %v1292_v0 }
 0x6c7   :  { %v1169_v19 = vpop.f32.mrf.mxu1 }
 0x6c8   :  { %v958_v20 = vmul.f32 -1.442695, %v1169_v19 }
 0x6c9   :  { %v741_v21 = vpop.f32.mrf.mxu1 }
 0x6ca   :  { %1259 = vpow2.f32 %v958_v20  ;;  %v957_v22 = vmul.f32 -1.442695, %v741_v21 }
 0x6cc   :  { %1261 = vpow2.f32 %v957_v22 }
 0x6d7   :  { %v1260_v23 = vpop.eup %1259 }
 0x6d8   :  { %v757_v24 = vadd.f32 1.0, %v1260_v23 }
 0x6d9   :  { %v1262_v25 = vpop.eup %1261 }
 0x6da   :  { %1263 = vrcp.f32 %v757_v24  ;;  %v756_v26 = vadd.f32 1.0, %v1262_v25 }
 0x6dc   :  { %1265 = vrcp.f32 %v756_v26 }
 0x6e7   :  { %v1264_v27 = vpop.eup %1263 }
 0x6e8   :  { %v1368_v28 = vmul.f32 %v1264_v27, %v499_v8 }
 0x6e9   :  { %v1266_v29 = vpop.eup %1265 }
 0x6ea   :  { %v1370_v30 = vmul.f32 %v1266_v29, %v494_v7  ;;  %790 = vrot.lane.b32.xlu0 %v1368_v28, %s1298_s19 }
 0x6ec   :  { %788 = vrot.lane.b32.xlu1 %v1370_v30, %s1298_s19 }
 0x6ee   :  { %786 = vrot.lane.b32.xlu0 %v1368_v28, %s1299_s20 }
 0x6f0   :  { %784 = vrot.lane.b32.xlu1 %v1370_v30, %s1299_s20 }
 0x6f2   :  { %782 = vrot.lane.b32.xlu0 %v1368_v28, %s1300_s21 }
 0x6f4   :  { %780 = vrot.lane.b32.xlu1 %v1370_v30, %s1300_s21 }
 0x6f6   :  { %778 = vrot.lane.b32.xlu0 %v1368_v28, %s1301_s22 }
 0x6f8   :  { %776 = vrot.lane.b32.xlu1 %v1370_v30, %s1301_s22 }
 0x6fa   :  { %774 = vrot.lane.b32.xlu0 %v1368_v28, %s1296_s17 }
 0x6fc   :  { %772 = vrot.lane.b32.xlu1 %v1370_v30, %s1296_s17 }
 0x6fe   :  { %770 = vrot.lane.b32.xlu0 %v1368_v28, %s1295_s0 }
 0x700   :  { %768 = vrot.lane.b32.xlu1 %v1370_v30, %s1295_s0 }
 0x702   :  { %766 = vrot.lane.b32.xlu0 %v1368_v28, %s1297_s18 }
 0x704   :  { %764 = vrot.lane.b32.xlu1 %v1370_v30, %s1297_s18 }
 0x706   :  { %794 = vperm.xlu0 %1253, %v74_v33  }
 0x75c   :  { %v791_v46 = vpop.permute.xlu0 %790 }
 0x75d   :  { %1171 = vmatpush3.msra.mxu1 %v791_v46 }
 0x75e   :  { %1172 = vmatprep.subr.mxu1 %v1292_v0  ;;  %v789_v47 = vpop.permute.xlu1 %788 }
 0x75f   :  { %1173 = vmatpush3.msra.mxu1 %v789_v47 }
 0x760   :  { %v787_v48 = vpop.permute.xlu0 %786  ;;  %1174 = vmatprep.subr.mxu1 %v1292_v0 }
 0x761   :  { %1175 = vmatpush3.msra.mxu1 %v787_v48 }
 0x762   :  { %1176 = vmatprep.subr.mxu1 %v1292_v0  ;;  %v785_v49 = vpop.permute.xlu1 %784 }
 0x763   :  { %1177 = vmatpush3.msra.mxu1 %v785_v49 }
 0x764   :  { %v783_v50 = vpop.permute.xlu0 %782  ;;  %1178 = vmatprep.subr.mxu1 %v1292_v0 }
 0x765   :  { %1179 = vmatpush3.msra.mxu1 %v783_v50 }
 0x766   :  { %1180 = vmatprep.subr.mxu1 %v1292_v0  ;;  %v781_v51 = vpop.permute.xlu1 %780 }
 0x767   :  { %1181 = vmatpush3.msra.mxu1 %v781_v51 }
 0x768   :  { %v779_v52 = vpop.permute.xlu0 %778  ;;  %1182 = vmatprep.subr.mxu1 %v1292_v0 }
 0x769   :  { %1183 = vmatpush3.msra.mxu1 %v779_v52 }
 0x76a   :  { %1184 = vmatprep.subr.mxu1 %v1292_v0  ;;  %v777_v53 = vpop.permute.xlu1 %776 }
 0x76b   :  { %1185 = vmatpush3.msra.mxu1 %v777_v53 }
 0x76c   :  { %v775_v54 = vpop.permute.xlu0 %774  ;;  %1186 = vmatprep.subr.mxu1 %v1292_v0 }
 0x76d   :  { %1187 = vmatpush3.msra.mxu1 %v775_v54 }
 0x76e   :  { %1188 = vmatprep.subr.mxu1 %v1292_v0  ;;  %v773_v55 = vpop.permute.xlu1 %772 }
 0x76f   :  { %1189 = vmatpush3.msra.mxu1 %v773_v55 }
 0x770   :  { %v771_v56 = vpop.permute.xlu0 %770  ;;  %1190 = vmatprep.subr.mxu1 %v1292_v0 }
 0x771   :  { %1191 = vmatpush3.msra.mxu1 %v771_v56 }
 0x772   :  { %1192 = vmatprep.subr.mxu1 %v1292_v0  ;;  %v769_v57 = vpop.permute.xlu1 %768 }
 0x773   :  { %1193 = vmatpush3.msra.mxu1 %v769_v57 }
 0x774   :  { %v767_v58 = vpop.permute.xlu0 %766  ;;  %1194 = vmatprep.subr.mxu1 %v1292_v0 }
 0x775   :  { %1195 = vmatpush3.msra.mxu1 %v767_v58 }
 0x776   :  { %1196 = vmatprep.subr.mxu1 %v1292_v0  ;;  %v765_v59 = vpop.permute.xlu1 %764 }
 0x777   :  { %1197 = vmatpush3.msra.mxu1 %v765_v59 }
 0x778   :  { %1198 = vmatprep.subr.mxu1 %v1292_v0 }
 0x779   :  { %1199 = vmatpush3.msra.mxu1 %v1368_v28 }
 0x77a   :  { %1200 = vmatprep.subr.mxu1 %v1292_v0 }
 0x77b   :  { %1201 = vmatpush3.msra.mxu1 %v1370_v30 }
 0x77c   :  { %1203 = vmatmul.mubr.f32.vlgmr.msra.gmra.mxu1 %v73_v60 }
 0x781   :  { %v795_v63 = vpop.permute.xlu0 %794 }
 0x83c   :  { %v863_v1 = vpop.f32.mrf.mxu1 }
 0x83d   :  { %v864_v2 = vadd.f32 %v863_v1, %v795_v63 }
 0x83e   :  { %v1204_v3 = vpop.f32.mrf.mxu1 }
 0x83f   :  { %1238 = vmatmul.mubr.f32.vlgmr.msra.gmra.mxu0 %v864_v2 }
 0x8ff   :  { %v933_v4 = vpop.f32.mrf.mxu0 }
 0x900   :  { %937 = vst [vmem:[%s1429_s2] sm:$0xff] %v933_v4 }
 0x901   :  { %v1239_v5 = vpop.f32.mrf.mxu0 }
 0x902   :  { %942 = vsyncpa [#allocation3], 1 }

</bundles_post_ra>
